<compile_context>
chip_gen: v6e
topology: v6e:2x2x1
jax: 0.10.0
libtpu: 0.0.40
codegen_flags: <defaults>
</compile_context>

<pallas_src>
import functools

import jax
import jax.numpy as jnp
from jax.experimental import pallas as pl
from jax.experimental.pallas import tpu as pltpu

_LANE = 128


def _round_up(x: int, m: int) -> int:
    return (x + m - 1) // m * m


def _physical_vmem_bytes() -> int:
    try:
        return int(pltpu.get_tpu_info().vmem_capacity_bytes)
    except Exception:
        return 64 * 1024 * 1024  # conservative (v7x per-TensorCore)


# --------------------------------------------------------------------------
# Kernel
# --------------------------------------------------------------------------
def _make_mlp_kernel(n_hidden: int):
    """Kernel over refs: (x, w_in, b_in, [w_h, b_h]*n_hidden, w_out, b_out, o)."""

    def kernel(*refs):
        x_ref, o_ref = refs[0], refs[-1]
        ws = refs[1:-1]
        # layer_in + ReLU: bf16 operands, f32 MXU accumulation, f32 elementwise.
        h = jnp.dot(x_ref[...], ws[0][...],
                    preferred_element_type=jnp.float32) + ws[1][...]
        h = jnp.maximum(h, 0.0)
        # hidden layers + ReLU (static Python loop, n_hidden known at trace).
        for l in range(n_hidden):
            w, b = ws[2 + 2 * l], ws[3 + 2 * l]
            h = jnp.dot(h.astype(jnp.bfloat16), w[...],
                        preferred_element_type=jnp.float32) + b[...]
            h = jnp.maximum(h, 0.0)
        # layer_out (no activation); lane-dense (128-padded) f32 store.
        out = jnp.dot(h.astype(jnp.bfloat16), ws[-2][...],
                      preferred_element_type=jnp.float32) + ws[-1][...]
        o_ref[...] = out.astype(o_ref.dtype)

    return kernel


# --------------------------------------------------------------------------
# Jitted apply (pads x in-jit, launches the pallas_call)
# --------------------------------------------------------------------------
@functools.partial(
    jax.jit,
    static_argnames=("n_hidden", "block_m", "d_out", "vmem_limit_bytes"))
def _fused_mlp_apply(x, params, *, n_hidden, block_m, d_out, vmem_limit_bytes):
    B, D_in = x.shape
    P_in = params[0].shape[0]
    P_out = params[-2].shape[1]
    B_pad = _round_up(B, block_m)

    # Pad + cast x inside the jit so it fuses into one XLA op.
    x_p = jnp.pad(x, ((0, B_pad - B), (0, P_in - D_in))).astype(jnp.bfloat16)

    grid = (B_pad // block_m,)

    def const_spec(arr):
        # Constant index_map => block never changes across the grid; a single
        # buffer halves resident-weight VMEM vs the default double buffering.
        return pl.BlockSpec(arr.shape, lambda i: (0, 0),
                            pipeline_mode=pl.Buffered(1))

    in_specs = ([pl.BlockSpec((block_m, P_in), lambda i: (i, 0))] +
                [const_spec(p) for p in params])

    out_p = pl.pallas_call(
        _make_mlp_kernel(n_hidden),
        out_shape=jax.ShapeDtypeStruct((B_pad, P_out), jnp.float32),
        grid_spec=pltpu.PrefetchScalarGridSpec(
            num_scalar_prefetch=0,
            grid=grid,
            in_specs=in_specs,
            out_specs=pl.BlockSpec((block_m, P_out), lambda i: (i, 0)),
        ),
        compiler_params=pltpu.CompilerParams(
            dimension_semantics=("parallel",),
            vmem_limit_bytes=vmem_limit_bytes,
        ),
    )(x_p, *params)
    return out_p[:B, :d_out]


# --------------------------------------------------------------------------
# Parameter preparation (do ONCE, reuse across forward calls)
# --------------------------------------------------------------------------
def _pad2(a, rows, cols, dtype):
    return jnp.pad(a, ((0, rows - a.shape[0]),
                       (0, cols - a.shape[1]))).astype(dtype)


def prepare_mlp_params(w_in, b_in, hidden_wb, w_out, b_out):
    """Pad feature dims to multiples of 128 and cast weights to bf16.

    Weights are given pre-transposed as [fan_in, fan_out]; biases as [1, fan_out].
    `hidden_wb` is a list of (w_h, b_h) pairs (depth - 1 entries).
    """
    D_in, D_hidden = w_in.shape
    D_out = w_out.shape[1]
    P_in, P_hid, P_out = (_round_up(d, _LANE) for d in (D_in, D_hidden, D_out))

    params = [_pad2(w_in, P_in, P_hid, jnp.bfloat16),
              _pad2(b_in, 1, P_hid, jnp.float32)]
    for (w_h, b_h) in hidden_wb:
        params += [_pad2(w_h, P_hid, P_hid, jnp.bfloat16),
                   _pad2(b_h, 1, P_hid, jnp.float32)]
    params += [_pad2(w_out, P_hid, P_out, jnp.bfloat16),
               _pad2(b_out, 1, P_out, jnp.float32)]
    return tuple(jax.device_put(p) for p in params)


# --------------------------------------------------------------------------
# Block-size / VMEM budget selection
# --------------------------------------------------------------------------
def _choose_block_m_and_vmem(B, P_in, P_hid, P_out, n_hidden):
    vmem_phys = _physical_vmem_bytes()

    # Single-buffered resident weights/biases.
    w_bytes = 2 * (P_in * P_hid + n_hidden * P_hid * P_hid + P_hid * P_out)
    b_bytes = 4 * ((1 + n_hidden) * P_hid + P_out)

    def budget(bm):
        x_tile = 2 * bm * P_in * 2        # bf16 input tile, double-buffered
        o_tile = 2 * bm * P_out * 4       # f32 output tile, double-buffered
        tmp = bm * P_hid * (4 + 2) * 2    # f32 h + bf16 recast, 2x headroom
        return w_bytes + b_bytes + x_tile + o_tile + tmp

    # 128-MiB-VMEM chips (v5e/v6e) can take bigger batch tiles than v7x (64 MiB).
    cap = 1024 if vmem_phys >= 100 * 1024 * 1024 else 512
    bm = min(_round_up(B, _LANE), cap)
    while bm > _LANE and budget(bm) > 0.7 * vmem_phys:
        bm //= 2

    # Multi-TC chips (v7x, 64-MiB VMEM): make sure a large batch yields >= 2
    # parallel grid steps so megacore sharding engages both TensorCores.
    B_pad = _round_up(B, bm)
    if vmem_phys < 100 * 1024 * 1024 and B_pad // bm == 1 and B > 512:
        bm = _round_up(pl.cdiv(B, 2), _LANE)

    vmem_limit = int(min(max(budget(bm) * 1.25 + (2 << 20), 16 << 20),
                         0.85 * vmem_phys))
    return bm, vmem_limit


def fused_mlp(x, params, d_out, *, block_m=None):
    """x: [B, D_in] f32; params: output of prepare_mlp_params()."""
    n_hidden = (len(params) - 4) // 2
    P_in, P_hid = params[0].shape
    P_out = params[-2].shape[1]
    auto_bm, vmem_limit = _choose_block_m_and_vmem(
        x.shape[0], P_in, P_hid, P_out, n_hidden)
    bm = auto_bm if block_m is None else block_m
    # TODO(synk): add a K/N-tiled fallback (extra 'arbitrary' grid axis + f32
    # VMEM accumulator) for hidden dims large enough that resident weights
    # exceed ~70% of VMEM; the fully-resident design covers P_hid up to ~2-3k
    # on v7x and ~4-6k on v5e/v6e.
    return _fused_mlp_apply(x, params, n_hidden=n_hidden, block_m=bm,
                            d_out=d_out, vmem_limit_bytes=vmem_limit)


# --------------------------------------------------------------------------
# Reference + demo
# --------------------------------------------------------------------------
def _init_linear(key, fan_in, fan_out):
    """PyTorch nn.Linear init: U(-1/sqrt(fan_in), 1/sqrt(fan_in)).
    Weight returned already transposed to [fan_in, fan_out]."""
    kw, kb = jax.random.split(key)
    bound = 1.0 / jnp.sqrt(jnp.float32(fan_in))
    w = jax.random.uniform(kw, (fan_in, fan_out), jnp.float32, -bound, bound)
    b = jax.random.uniform(kb, (1, fan_out), jnp.float32, -bound, bound)
    return w, b


def mlp_reference(x, w_in, b_in, hidden_wb, w_out, b_out):
    h = jnp.maximum(x @ w_in + b_in, 0.0)
    for (w_h, b_h) in hidden_wb:
        h = jnp.maximum(h @ w_h + b_h, 0.0)
    return h @ w_out + b_out


if __name__ == "__main__":
    # Shapes consistent with MLP(D_in=32, D_hidden=64, D_out=16, depth=2).
    B, D_in, D_hidden, D_out, depth = 128, 32, 64, 16, 2

    key = jax.random.PRNGKey(0)
    kx, k0, k1, k2 = jax.random.split(key, 4)

    x = jax.random.normal(kx, (B, D_in), jnp.float32)
    w_in, b_in = _init_linear(k0, D_in, D_hidden)
    hidden_wb = []
    for d in range(depth - 1):
        w_h, b_h = _init_linear(jax.random.fold_in(k1, d), D_hidden, D_hidden)
        hidden_wb.append((w_h, b_h))
    w_out, b_out = _init_linear(k2, D_hidden, D_out)

    # Pad/cast weights once; reuse across forwards.
    params = prepare_mlp_params(w_in, b_in, hidden_wb, w_out, b_out)

    out = fused_mlp(x, params, D_out)
    out = jax.block_until_ready(out)

    ref = mlp_reference(x, w_in, b_in, hidden_wb, w_out, b_out)
    assert out.shape == (B, D_out)
    # bf16 matmul operands with f32 accumulation -> loosened tolerance vs f32 ref.
    assert jnp.allclose(out, ref, atol=2e-2, rtol=2e-2), "mismatch vs reference"

    print("KERNEL_OK")
</pallas_src>

<mosaic_0001>
module attributes {stable_mosaic.version = 11 : i64} {
  func.func @kernel(%arg0: i32, %arg1: memref<128x128xbf16, #tpu.memory_space<vmem>>, %arg2: memref<128x128xbf16, #tpu.memory_space<vmem>>, %arg3: memref<1x128xf32, #tpu.memory_space<vmem>>, %arg4: memref<128x128xbf16, #tpu.memory_space<vmem>>, %arg5: memref<1x128xf32, #tpu.memory_space<vmem>>, %arg6: memref<128x128xbf16, #tpu.memory_space<vmem>>, %arg7: memref<1x128xf32, #tpu.memory_space<vmem>>, %arg8: memref<128x128xf32, #tpu.memory_space<vmem>>) attributes {dimension_semantics = [#tpu.dimension_semantics<parallel>], iteration_bounds = array<i64: 1>, scalar_prefetch = 0 : i64, scratch_operands = 0 : i64, tpu.core_type = #tpu.core_type<tc>, window_params = [{transform_indices = @transform_0, window_bounds = array<i64: 128, 128>}, {pipeline_mode = #tpu.pipeline_mode<synchronous>, transform_indices = @transform_1, window_bounds = array<i64: 128, 128>}, {pipeline_mode = #tpu.pipeline_mode<synchronous>, transform_indices = @transform_2, window_bounds = array<i64: 1, 128>}, {pipeline_mode = #tpu.pipeline_mode<synchronous>, transform_indices = @transform_3, window_bounds = array<i64: 128, 128>}, {pipeline_mode = #tpu.pipeline_mode<synchronous>, transform_indices = @transform_4, window_bounds = array<i64: 1, 128>}, {pipeline_mode = #tpu.pipeline_mode<synchronous>, transform_indices = @transform_5, window_bounds = array<i64: 128, 128>}, {pipeline_mode = #tpu.pipeline_mode<synchronous>, transform_indices = @transform_6, window_bounds = array<i64: 1, 128>}, {transform_indices = @transform_7, window_bounds = array<i64: 128, 128>}]} {
    %c0 = arith.constant 0 : index
    %c0_0 = arith.constant 0 : index
    %0 = vector.load %arg1[%c0, %c0_0] : memref<128x128xbf16, #tpu.memory_space<vmem>>, vector<128x128xbf16>
    %c0_1 = arith.constant 0 : index
    %c0_2 = arith.constant 0 : index
    %1 = vector.load %arg2[%c0_1, %c0_2] : memref<128x128xbf16, #tpu.memory_space<vmem>>, vector<128x128xbf16>
    %cst = arith.constant dense<0.000000e+00> : vector<128x128xf32>
    %2 = tpu.matmul %0, %1, %cst {dimension_numbers = #tpu.dot_dimension_numbers<[1], [0], [0], [1], [0, 0, 1, 1], [], []>} : vector<128x128xbf16>, vector<128x128xbf16>, vector<128x128xf32> -> vector<128x128xf32>
    %c0_3 = arith.constant 0 : index
    %c0_4 = arith.constant 0 : index
    %3 = vector.load %arg3[%c0_3, %c0_4] : memref<1x128xf32, #tpu.memory_space<vmem>>, vector<1x128xf32>
    %4 = vector.broadcast %3 : vector<1x128xf32> to vector<128x128xf32>
    %5 = arith.addf %2, %4 : vector<128x128xf32>
    %cst_5 = arith.constant 0.000000e+00 : f32
    %6 = vector.broadcast %cst_5 : f32 to vector<128x128xf32>
    %7 = arith.maximumf %5, %6 : vector<128x128xf32>
    %8 = arith.truncf %7 : vector<128x128xf32> to vector<128x128xbf16>
    %c0_6 = arith.constant 0 : index
    %c0_7 = arith.constant 0 : index
    %9 = vector.load %arg4[%c0_6, %c0_7] : memref<128x128xbf16, #tpu.memory_space<vmem>>, vector<128x128xbf16>
    %cst_8 = arith.constant dense<0.000000e+00> : vector<128x128xf32>
    %10 = tpu.matmul %8, %9, %cst_8 {dimension_numbers = #tpu.dot_dimension_numbers<[1], [0], [0], [1], [0, 0, 1, 1], [], []>} : vector<128x128xbf16>, vector<128x128xbf16>, vector<128x128xf32> -> vector<128x128xf32>
    %c0_9 = arith.constant 0 : index
    %c0_10 = arith.constant 0 : index
    %11 = vector.load %arg5[%c0_9, %c0_10] : memref<1x128xf32, #tpu.memory_space<vmem>>, vector<1x128xf32>
    %12 = vector.broadcast %11 : vector<1x128xf32> to vector<128x128xf32>
    %13 = arith.addf %10, %12 : vector<128x128xf32>
    %cst_11 = arith.constant 0.000000e+00 : f32
    %14 = vector.broadcast %cst_11 : f32 to vector<128x128xf32>
    %15 = arith.maximumf %13, %14 : vector<128x128xf32>
    %16 = arith.truncf %15 : vector<128x128xf32> to vector<128x128xbf16>
    %c0_12 = arith.constant 0 : index
    %c0_13 = arith.constant 0 : index
    %17 = vector.load %arg6[%c0_12, %c0_13] : memref<128x128xbf16, #tpu.memory_space<vmem>>, vector<128x128xbf16>
    %cst_14 = arith.constant dense<0.000000e+00> : vector<128x128xf32>
    %18 = tpu.matmul %16, %17, %cst_14 {dimension_numbers = #tpu.dot_dimension_numbers<[1], [0], [0], [1], [0, 0, 1, 1], [], []>} : vector<128x128xbf16>, vector<128x128xbf16>, vector<128x128xf32> -> vector<128x128xf32>
    %c0_15 = arith.constant 0 : index
    %c0_16 = arith.constant 0 : index
    %19 = vector.load %arg7[%c0_15, %c0_16] : memref<1x128xf32, #tpu.memory_space<vmem>>, vector<1x128xf32>
    %20 = vector.broadcast %19 : vector<1x128xf32> to vector<128x128xf32>
    %21 = arith.addf %18, %20 : vector<128x128xf32>
    %c0_17 = arith.constant 0 : index
    %c0_18 = arith.constant 0 : index
    %22 = vector.load %arg8[%c0_17, %c0_18] : memref<128x128xf32, #tpu.memory_space<vmem>>, vector<128x128xf32>
    tpu.vector_store %arg8[%c0_17, %c0_18], %21 {strides = array<i32>} : memref<128x128xf32, #tpu.memory_space<vmem>>, vector<128x128xf32>,
    return
  }
  func.func @transform_0(%arg0: i32) -> (i32, i32) {
    %c0_i32 = arith.constant 0 : i32
    %c0_i32_0 = arith.constant 0 : i32
    return %arg0, %c0_i32 : i32, i32
  }
  func.func @transform_1(%arg0: i32) -> (i32, i32) {
    %c0_i32 = arith.constant 0 : i32
    %c0_i32_0 = arith.constant 0 : i32
    %c0_i32_1 = arith.constant 0 : i32
    return %c0_i32, %c0_i32_0 : i32, i32
  }
  func.func @transform_2(%arg0: i32) -> (i32, i32) {
    %c0_i32 = arith.constant 0 : i32
    %c0_i32_0 = arith.constant 0 : i32
    %c0_i32_1 = arith.constant 0 : i32
    return %c0_i32, %c0_i32_0 : i32, i32
  }
  func.func @transform_3(%arg0: i32) -> (i32, i32) {
    %c0_i32 = arith.constant 0 : i32
    %c0_i32_0 = arith.constant 0 : i32
    %c0_i32_1 = arith.constant 0 : i32
    return %c0_i32, %c0_i32_0 : i32, i32
  }
  func.func @transform_4(%arg0: i32) -> (i32, i32) {
    %c0_i32 = arith.constant 0 : i32
    %c0_i32_0 = arith.constant 0 : i32
    %c0_i32_1 = arith.constant 0 : i32
    return %c0_i32, %c0_i32_0 : i32, i32
  }
  func.func @transform_5(%arg0: i32) -> (i32, i32) {
    %c0_i32 = arith.constant 0 : i32
    %c0_i32_0 = arith.constant 0 : i32
    %c0_i32_1 = arith.constant 0 : i32
    return %c0_i32, %c0_i32_0 : i32, i32
  }
  func.func @transform_6(%arg0: i32) -> (i32, i32) {
    %c0_i32 = arith.constant 0 : i32
    %c0_i32_0 = arith.constant 0 : i32
    %c0_i32_1 = arith.constant 0 : i32
    return %c0_i32, %c0_i32_0 : i32, i32
  }
  func.func @transform_7(%arg0: i32) -> (i32, i32) {
    %c0_i32 = arith.constant 0 : i32
    %c0_i32_0 = arith.constant 0 : i32
    return %arg0, %c0_i32 : i32, i32
  }
}

</mosaic_0001>

<bundles_post_ra>
// kernel: _fused_mlp_apply.1
= control target key start
LH: loop header
LB: loop body
LE: loop exit
PB: predicated region body
PF: predicated region fallthrough
CT: control target
= control target key end

     0   :  { %s1089_s1 = inlined_call_operand.vmem [shape: bf16[128,128], index: 1, kind: input, shape index: {}]   ;;  %s1090_s0 = inlined_call_operand.vmem [shape: bf16[128,128], index: 0, kind: input, shape index: {}]   ;;  %s1091_s3 = inlined_call_operand.vmem [shape: bf16[128,128], index: 3, kind: input, shape index: {}]   ;;  %s1092_s5 = inlined_call_operand.vmem [shape: bf16[128,128], index: 5, kind: input, shape index: {}]   ;;  %s1093_s2 = inlined_call_operand.vmem [shape: f32[1,128], index: 2, kind: input, shape index: {}]   ;;  %s1094_s4 = inlined_call_operand.vmem [shape: f32[1,128], index: 4, kind: input, shape index: {}]   ;;  %s1095_s6 = inlined_call_operand.vmem [shape: f32[1,128], index: 6, kind: input, shape index: {}]   ;;  %s1096_s7 = inlined_call_operand.vmem [shape: f32[128,128], index: 7, kind: output, shape index: {}]  }
   0x1   :  { %v858_v0 = vld [vmem:[%s1089_s1 + $0x38] sm:$0xff]   ;;  %v859_v1 = vld [vmem:[%s1089_s1 + $0x30] sm:$0xff]   ;;  %v860_v2 = vld [vmem:[%s1089_s1 + $0x28] sm:$0xff]  }
   0x2   :  { %746 = vmatprep.subr.bf16.mxu0 %v858_v0  ;;  %v861_v3 = vld [vmem:[%s1089_s1 + $0x20] sm:$0xff]   ;;  %v862_v5 = vld [vmem:[%s1089_s1 + $0x18] sm:$0xff]   ;;  %v863_v6 = vld [vmem:[%s1089_s1 + $0x10] sm:$0xff]  }
   0x3   :  { %747 = vmatpush3.bf16.msra.mxu0 %v858_v0  ;;  %v866_v4 = vld [vmem:[%s1090_s0] sm:$0xff]   ;;  %v874_v7 = vld [vmem:[%s1091_s3 + $0x38] sm:$0xff]   ;;  %v875_v8 = vld [vmem:[%s1091_s3 + $0x30] sm:$0xff]  }
   0x4   :  { %748 = vmatprep.subr.bf16.mxu0 %v859_v1  ;;  %762 = vmatprep.mubr.bf16.mxu0 %v866_v4  ;;  %v864_v9 = vld [vmem:[%s1089_s1 + $0x8] sm:$0xff]   ;;  %v865_v11 = vld [vmem:[%s1089_s1] sm:$0xff]   ;;  %v878_v13 = vld [vmem:[%s1091_s3 + $0x18] sm:$0xff]  }
   0x5   :  { %778 = vmatprep.subr.bf16.mxu1 %v874_v7  ;;  %v876_v10 = vld [vmem:[%s1091_s3 + $0x28] sm:$0xff]   ;;  %v877_v12 = vld [vmem:[%s1091_s3 + $0x20] sm:$0xff]   ;;  %v868_v15 = vld [vmem:[%s1090_s0 + $0x10] sm:$0xff]  }
   0x6   :  { %779 = vmatpush3.bf16.msra.mxu1 %v874_v7  ;;  %v867_v14 = vld [vmem:[%s1090_s0 + $0x8] sm:$0xff]   ;;  %v869_v16 = vld [vmem:[%s1090_s0 + $0x18] sm:$0xff]   ;;  %v870_v17 = vld [vmem:[%s1090_s0 + $0x20] sm:$0xff]  }
   0x7   :  { %749 = vmatpush3.bf16.msra.mxu0 %v859_v1  ;;  %780 = vmatprep.subr.bf16.mxu1 %v875_v8  ;;  %v871_v18 = vld [vmem:[%s1090_s0 + $0x28] sm:$0xff]   ;;  %v872_v19 = vld [vmem:[%s1090_s0 + $0x30] sm:$0xff]   ;;  %v873_v20 = vld [vmem:[%s1090_s0 + $0x38] sm:$0xff]  }
   0x8   :  { %750 = vmatprep.subr.bf16.mxu0 %v860_v2  ;;  %v879_v21 = vld [vmem:[%s1091_s3 + $0x10] sm:$0xff]   ;;  %v880_v22 = vld [vmem:[%s1091_s3 + $0x8] sm:$0xff]   ;;  %v881_v23 = vld [vmem:[%s1091_s3] sm:$0xff]  }
   0x9   :  { %v882_v24 = vld [vmem:[%s1092_s5 + $0x38] sm:$0xff]   ;;  %v883_v25 = vld [vmem:[%s1092_s5 + $0x30] sm:$0xff]   ;;  %v884_v26 = vld [vmem:[%s1092_s5 + $0x28] sm:$0xff]  }
   0xa   :  { %781 = vmatpush3.bf16.msra.mxu1 %v875_v8  ;;  %v885_v27 = vld [vmem:[%s1092_s5 + $0x20] sm:$0xff]   ;;  %v1017_v28 = vld [vmem:[%s1092_s5 + $0x18] sm:$0xff]  }
   0xb   :  { %751 = vmatpush3.bf16.msra.mxu0 %v860_v2  ;;  %782 = vmatprep.subr.bf16.mxu1 %v876_v10  ;;  %v663_v31 = vld [vmem:[%s1093_s2] ss:$0 sm:$0xff] }
   0xc   :  { %752 = vmatprep.subr.bf16.mxu0 %v861_v3 }
   0xe   :  { %783 = vmatpush3.bf16.msra.mxu1 %v876_v10 }
   0xf   :  { %753 = vmatpush3.bf16.msra.mxu0 %v861_v3  ;;  %784 = vmatprep.subr.bf16.mxu1 %v877_v12 }
  0x10   :  { %754 = vmatprep.subr.bf16.mxu0 %v862_v5 }
  0x12   :  { %785 = vmatpush3.bf16.msra.mxu1 %v877_v12 }
  0x13   :  { %755 = vmatpush3.bf16.msra.mxu0 %v862_v5  ;;  %786 = vmatprep.subr.bf16.mxu1 %v878_v13 }
  0x14   :  { %756 = vmatprep.subr.bf16.mxu0 %v863_v6 }
  0x16   :  { %787 = vmatpush3.bf16.msra.mxu1 %v878_v13 }
  0x17   :  { %757 = vmatpush3.bf16.msra.mxu0 %v863_v6  ;;  %788 = vmatprep.subr.bf16.mxu1 %v879_v21 }
  0x18   :  { %758 = vmatprep.subr.bf16.mxu0 %v864_v9 }
  0x1a   :  { %789 = vmatpush3.bf16.msra.mxu1 %v879_v21 }
  0x1b   :  { %759 = vmatpush3.bf16.msra.mxu0 %v864_v9  ;;  %790 = vmatprep.subr.bf16.mxu1 %v880_v22 }
  0x1c   :  { %760 = vmatprep.subr.bf16.mxu0 %v865_v11 }
  0x1e   :  { %791 = vmatpush3.bf16.msra.mxu1 %v880_v22  ;;  %v887_v22 = vld [vmem:[%s1092_s5 + $0x10] sm:$0xff]  }
  0x1f   :  { %761 = vmatpush3.bf16.msra.mxu0 %v865_v11  ;;  %792 = vmatprep.subr.bf16.mxu1 %v881_v23 }
  0x20   :  { %810 = vmatprep.subr.bf16.mxu0 %v882_v24 }
  0x22   :  { %763 = vmatmul.mubr.bf16.vlgmr.msra.gmra.mxu0 %v867_v14  ;;  %793 = vmatpush3.bf16.msra.mxu1 %v881_v23  ;;  %v888_v23 = vld [vmem:[%s1092_s5 + $0x8] sm:$0xff]  }
  0x23   :  { %766 = vmatprep.mubr.bf16.mxu0 %v868_v15  ;;  %842 = vmatprep.subr.bf16.mxu1 %v882_v24 }
  0x24   :  { %811 = vmatpush3.bf16.msra.mxu0 %v882_v24 }
  0x25   :  { %812 = vmatprep.subr.bf16.mxu0 %v883_v25 }
  0x28   :  { %813 = vmatpush3.bf16.msra.mxu0 %v883_v25 }
  0x29   :  { %814 = vmatprep.subr.bf16.mxu0 %v884_v26 }
  0x2a   :  { %767 = vmatmul.mubr.bf16.gmra.mxu0 %v869_v16 }
  0x2b   :  { %770 = vmatprep.mubr.bf16.mxu0 %v870_v17 }
  0x2c   :  { %815 = vmatpush3.bf16.msra.mxu0 %v884_v26 }
  0x2d   :  { %816 = vmatprep.subr.bf16.mxu0 %v885_v27 }
  0x30   :  { %817 = vmatpush3.bf16.msra.mxu0 %v885_v27 }
  0x31   :  { %818 = vmatprep.subr.bf16.mxu0 %v1017_v28 }
  0x32   :  { %771 = vmatmul.mubr.bf16.gmra.mxu0 %v871_v18 }
  0x33   :  { %774 = vmatprep.mubr.bf16.mxu0 %v872_v19 }
  0x34   :  { %819 = vmatpush3.bf16.msra.mxu0 %v1017_v28 }
  0x35   :  { %820 = vmatprep.subr.bf16.mxu0 %v887_v22 }
  0x38   :  { %821 = vmatpush3.bf16.msra.mxu0 %v887_v22 }
  0x39   :  { %822 = vmatprep.subr.bf16.mxu0 %v888_v23 }
  0x3a   :  { %775 = vmatmul.mubr.bf16.gmra.mxu0 %v873_v20 }
  0x3c   :  { %823 = vmatpush3.bf16.msra.mxu0 %v888_v23 }
  0xe2   :  { %v764_v29 = vpop.f32.mrf.mxu0 }
  0xe3   :  { %v205_v35 = vadd.f32 %v764_v29, %v663_v31 }
  0xe4   :  { %v196_v30 = vpop.f32.mrf.mxu0 }
  0xe5   :  { %v197_v33 = vadd.f32 %v663_v31, %v196_v30  ;;  %v261_v42 = vmax.f32 %v205_v35, 0.0 }
  0xe6   :  { %v765_v32 = vpop.f32.mrf.mxu0 }
  0xe7   :  { %v208_v34 = vadd.f32 %v765_v32, %v663_v31  ;;  %v259_v40 = vmax.f32 %v197_v33, 0.0 }
  0xe8   :  { %v199_v36 = vpop.f32.mrf.mxu0 }
  0xe9   :  { %v200_v37 = vadd.f32 %v663_v31, %v199_v36  ;;  %v262_v38 = vmax.f32 %v208_v34, 0.0 }
  0xea   :  { %v768_v39 = vpop.f32.mrf.mxu0 }
  0xeb   :  { %v260_v41 = vmax.f32 %v200_v37, 0.0  ;;  %v276_v45 = vpack.c.bf16 %v262_v38, %v261_v42  ;;  %v221_v49 = vadd.f32 %v768_v39, %v663_v31 }
  0xec   :  { %v212_v43 = vpop.f32.mrf.mxu0 }
  0xed   :  { %v275_v44 = vpack.c.bf16 %v260_v41, %v259_v40  ;;  %v213_v47 = vadd.f32 %v663_v31, %v212_v43  ;;  %v265_v56 = vmax.f32 %v221_v49, 0.0 }
  0xee   :  { %v769_v46 = vpop.f32.mrf.mxu0 }
  0xef   :  { %v224_v48 = vadd.f32 %v769_v46, %v663_v31  ;;  %794 = vmatprep.mubr.bf16.mxu1 %v275_v44  ;;  %v263_v54 = vmax.f32 %v213_v47, 0.0 }
  0xf0   :  { %v215_v50 = vpop.f32.mrf.mxu0  ;;  %795 = vmatmul.mubr.bf16.vlgmr.msra.gmra.mxu1 %v276_v45 }
  0xf1   :  { %v216_v51 = vadd.f32 %v663_v31, %v215_v50  ;;  %850 = vmatpush3.bf16.msra.mxu1 %v882_v24  ;;  %v266_v52 = vmax.f32 %v224_v48, 0.0  ;;  %v889_v24 = vld [vmem:[%s1092_s5] sm:$0xff]  }
  0xf2   :  { %v772_v53 = vpop.f32.mrf.mxu0  ;;  %843 = vmatprep.subr.bf16.mxu1 %v883_v25  ;;  %824 = vmatprep.subr.bf16.mxu0 %v889_v24 }
  0xf3   :  { %v264_v55 = vmax.f32 %v216_v51, 0.0  ;;  %v278_v59 = vpack.c.bf16 %v266_v52, %v265_v56  ;;  %v237_v63 = vadd.f32 %v772_v53, %v663_v31  ;;  %825 = vmatpush3.bf16.msra.mxu0 %v889_v24 }
  0xf4   :  { %v228_v57 = vpop.f32.mrf.mxu0 }
  0xf5   :  { %v277_v58 = vpack.c.bf16 %v264_v55, %v263_v54  ;;  %851 = vmatpush3.bf16.msra.mxu1 %v883_v25  ;;  %v229_v61 = vadd.f32 %v663_v31, %v228_v57  ;;  %v269_v6 = vmax.f32 %v237_v63, 0.0 }
  0xf6   :  { %v773_v60 = vpop.f32.mrf.mxu0  ;;  %844 = vmatprep.subr.bf16.mxu1 %v884_v26 }
  0xf7   :  { %v240_v62 = vadd.f32 %v773_v60, %v663_v31  ;;  %798 = vmatprep.mubr.bf16.mxu1 %v277_v58  ;;  %v267_v4 = vmax.f32 %v229_v61, 0.0 }
  0xf8   :  { %v231_v0 = vpop.f32.mrf.mxu0  ;;  %799 = vmatmul.mubr.bf16.gmra.mxu1 %v278_v59 }
  0xf9   :  { %v232_v1 = vadd.f32 %v663_v31, %v231_v0  ;;  %852 = vmatpush3.bf16.msra.mxu1 %v884_v26  ;;  %v270_v2 = vmax.f32 %v240_v62, 0.0 }
  0xfa   :  { %v776_v3 = vpop.f32.mrf.mxu0  ;;  %845 = vmatprep.subr.bf16.mxu1 %v885_v27 }
  0xfb   :  { %v268_v5 = vmax.f32 %v232_v1, 0.0  ;;  %v280_v9 = vpack.c.bf16 %v270_v2, %v269_v6  ;;  %v253_v13 = vadd.f32 %v776_v3, %v663_v31 }
  0xfc   :  { %v244_v7 = vpop.f32.mrf.mxu0 }
  0xfd   :  { %v279_v8 = vpack.c.bf16 %v268_v5, %v267_v4  ;;  %853 = vmatpush3.bf16.msra.mxu1 %v885_v27  ;;  %v245_v11 = vadd.f32 %v663_v31, %v244_v7  ;;  %v273_v19 = vmax.f32 %v253_v13, 0.0  ;;  %v680_v27 = vld [vmem:[%s1094_s4] ss:$0 sm:$0xff] }
  0xfe   :  { %v777_v10 = vpop.f32.mrf.mxu0  ;;  %846 = vmatprep.subr.bf16.mxu1 %v1017_v28 }
  0xff   :  { %v256_v12 = vadd.f32 %v777_v10, %v663_v31  ;;  %802 = vmatprep.mubr.bf16.mxu1 %v279_v8  ;;  %v271_v17 = vmax.f32 %v245_v11, 0.0 }
 0x100   :  { %v247_v14 = vpop.f32.mrf.mxu0  ;;  %803 = vmatmul.mubr.bf16.gmra.mxu1 %v280_v9 }
 0x101   :  { %v248_v15 = vadd.f32 %v663_v31, %v247_v14  ;;  %854 = vmatpush3.bf16.msra.mxu1 %v1017_v28  ;;  %v274_v16 = vmax.f32 %v256_v12, 0.0 }
 0x102   :  { %847 = vmatprep.subr.bf16.mxu1 %v887_v22 }
 0x103   :  { %v272_v18 = vmax.f32 %v248_v15, 0.0  ;;  %v282_v21 = vpack.c.bf16 %v274_v16, %v273_v19 }
 0x105   :  { %v281_v20 = vpack.c.bf16 %v272_v18, %v271_v17  ;;  %855 = vmatpush3.bf16.msra.mxu1 %v887_v22  ;;  %v689_v18 = vld [vmem:[%s1095_s6] ss:$0 sm:$0xff] }
 0x106   :  { %848 = vmatprep.subr.bf16.mxu1 %v888_v23 }
 0x107   :  { %806 = vmatprep.mubr.bf16.mxu1 %v281_v20 }
 0x108   :  { %807 = vmatmul.mubr.bf16.gmra.mxu1 %v282_v21 }
 0x109   :  { %856 = vmatpush3.bf16.msra.mxu1 %v888_v23 }
 0x10a   :  { %849 = vmatprep.subr.bf16.mxu1 %v889_v24 }
 0x10d   :  { %857 = vmatpush3.bf16.msra.mxu1 %v889_v24 }
 0x1b0   :  { %v796_v25 = vpop.f32.mrf.mxu1 }
 0x1b1   :  { %v397_v31 = vadd.f32 %v796_v25, %v680_v27 }
 0x1b2   :  { %v388_v26 = vpop.f32.mrf.mxu1 }
 0x1b3   :  { %v389_v29 = vadd.f32 %v680_v27, %v388_v26  ;;  %v453_v38 = vmax.f32 %v397_v31, 0.0 }
 0x1b4   :  { %v797_v28 = vpop.f32.mrf.mxu1 }
 0x1b5   :  { %v400_v30 = vadd.f32 %v797_v28, %v680_v27  ;;  %v451_v36 = vmax.f32 %v389_v29, 0.0 }
 0x1b6   :  { %v391_v32 = vpop.f32.mrf.mxu1 }
 0x1b7   :  { %v392_v33 = vadd.f32 %v680_v27, %v391_v32  ;;  %v454_v34 = vmax.f32 %v400_v30, 0.0 }
 0x1b8   :  { %v800_v35 = vpop.f32.mrf.mxu1 }
 0x1b9   :  { %v452_v37 = vmax.f32 %v392_v33, 0.0  ;;  %v468_v41 = vpack.c.bf16 %v454_v34, %v453_v38  ;;  %v413_v45 = vadd.f32 %v800_v35, %v680_v27 }
 0x1ba   :  { %v404_v39 = vpop.f32.mrf.mxu1 }
 0x1bb   :  { %v467_v40 = vpack.c.bf16 %v452_v37, %v451_v36  ;;  %v405_v43 = vadd.f32 %v680_v27, %v404_v39  ;;  %v457_v52 = vmax.f32 %v413_v45, 0.0 }
 0x1bc   :  { %v801_v42 = vpop.f32.mrf.mxu1 }
 0x1bd   :  { %v416_v44 = vadd.f32 %v801_v42, %v680_v27  ;;  %826 = vmatprep.mubr.bf16.mxu0 %v467_v40  ;;  %v455_v50 = vmax.f32 %v405_v43, 0.0 }
 0x1be   :  { %v407_v46 = vpop.f32.mrf.mxu1  ;;  %827 = vmatmul.mubr.bf16.vlgmr.msra.gmra.mxu0 %v468_v41 }
 0x1bf   :  { %v408_v47 = vadd.f32 %v680_v27, %v407_v46  ;;  %v458_v48 = vmax.f32 %v416_v44, 0.0 }
 0x1c0   :  { %v804_v49 = vpop.f32.mrf.mxu1 }
 0x1c1   :  { %v456_v51 = vmax.f32 %v408_v47, 0.0  ;;  %v470_v55 = vpack.c.bf16 %v458_v48, %v457_v52  ;;  %v429_v59 = vadd.f32 %v804_v49, %v680_v27 }
 0x1c2   :  { %v420_v53 = vpop.f32.mrf.mxu1 }
 0x1c3   :  { %v469_v54 = vpack.c.bf16 %v456_v51, %v455_v50  ;;  %v421_v57 = vadd.f32 %v680_v27, %v420_v53  ;;  %v461_v2 = vmax.f32 %v429_v59, 0.0 }
 0x1c4   :  { %v805_v56 = vpop.f32.mrf.mxu1 }
 0x1c5   :  { %v432_v58 = vadd.f32 %v805_v56, %v680_v27  ;;  %830 = vmatprep.mubr.bf16.mxu0 %v469_v54  ;;  %v459_v0 = vmax.f32 %v421_v57, 0.0 }
 0x1c6   :  { %v423_v60 = vpop.f32.mrf.mxu1  ;;  %831 = vmatmul.mubr.bf16.gmra.mxu0 %v470_v55 }
 0x1c7   :  { %v424_v61 = vadd.f32 %v680_v27, %v423_v60  ;;  %v462_v62 = vmax.f32 %v432_v58, 0.0 }
 0x1c8   :  { %v808_v63 = vpop.f32.mrf.mxu1 }
 0x1c9   :  { %v460_v1 = vmax.f32 %v424_v61, 0.0  ;;  %v472_v5 = vpack.c.bf16 %v462_v62, %v461_v2  ;;  %v445_v9 = vadd.f32 %v808_v63, %v680_v27 }
 0x1ca   :  { %v436_v3 = vpop.f32.mrf.mxu1 }
 0x1cb   :  { %v471_v4 = vpack.c.bf16 %v460_v1, %v459_v0  ;;  %v437_v7 = vadd.f32 %v680_v27, %v436_v3  ;;  %v465_v15 = vmax.f32 %v445_v9, 0.0 }
 0x1cc   :  { %v809_v6 = vpop.f32.mrf.mxu1 }
 0x1cd   :  { %v448_v8 = vadd.f32 %v809_v6, %v680_v27  ;;  %834 = vmatprep.mubr.bf16.mxu1 %v471_v4  ;;  %v463_v13 = vmax.f32 %v437_v7, 0.0 }
 0x1ce   :  { %v439_v10 = vpop.f32.mrf.mxu1  ;;  %835 = vmatmul.mubr.bf16.vlgmr.msra.gmra.mxu1 %v472_v5 }
 0x1cf   :  { %v440_v11 = vadd.f32 %v680_v27, %v439_v10  ;;  %v466_v12 = vmax.f32 %v448_v8, 0.0 }
 0x1d1   :  { %v464_v14 = vmax.f32 %v440_v11, 0.0  ;;  %v474_v17 = vpack.c.bf16 %v466_v12, %v465_v15 }
 0x1d3   :  { %v473_v16 = vpack.c.bf16 %v464_v14, %v463_v13 }
 0x1d5   :  { %838 = vmatprep.mubr.bf16.mxu1 %v473_v16 }
 0x1d6   :  { %839 = vmatmul.mubr.bf16.gmra.mxu1 %v474_v17 }
 0x27e   :  { %v828_v19 = vpop.f32.mrf.mxu0 }
 0x27f   :  { %v589_v20 = vadd.f32 %v828_v19, %v689_v18 }
 0x280   :  { %v580_v21 = vpop.f32.mrf.mxu0 }
 0x281   :  { %645 = vst [vmem:[%s1096_s7 + $0x10] sm:$0xff] %v589_v20  ;;  %v581_v22 = vadd.f32 %v689_v18, %v580_v21 }
 0x282   :  { %v829_v23 = vpop.f32.mrf.mxu0 }
 0x283   :  { %643 = vst [vmem:[%s1096_s7] sm:$0xff] %v581_v22  ;;  %v592_v24 = vadd.f32 %v829_v23, %v689_v18 }
 0x284   :  { %v583_v25 = vpop.f32.mrf.mxu0 }
 0x285   :  { %646 = vst [vmem:[%s1096_s7 + $0x18] sm:$0xff] %v592_v24  ;;  %v584_v26 = vadd.f32 %v689_v18, %v583_v25 }
 0x286   :  { %v832_v27 = vpop.f32.mrf.mxu0 }
 0x287   :  { %644 = vst [vmem:[%s1096_s7 + $0x8] sm:$0xff] %v584_v26  ;;  %v605_v28 = vadd.f32 %v832_v27, %v689_v18 }
 0x288   :  { %v596_v29 = vpop.f32.mrf.mxu0 }
 0x289   :  { %649 = vst [vmem:[%s1096_s7 + $0x30] sm:$0xff] %v605_v28  ;;  %v597_v30 = vadd.f32 %v689_v18, %v596_v29 }
 0x28a   :  { %v833_v31 = vpop.f32.mrf.mxu0 }
 0x28b   :  { %647 = vst [vmem:[%s1096_s7 + $0x20] sm:$0xff] %v597_v30  ;;  %v608_v32 = vadd.f32 %v833_v31, %v689_v18 }
 0x28c   :  { %v599_v33 = vpop.f32.mrf.mxu0 }
 0x28d   :  { %650 = vst [vmem:[%s1096_s7 + $0x38] sm:$0xff] %v608_v32  ;;  %v600_v34 = vadd.f32 %v689_v18, %v599_v33 }
 0x28e   :  { %v836_v35 = vpop.f32.mrf.mxu1 }
 0x28f   :  { %648 = vst [vmem:[%s1096_s7 + $0x28] sm:$0xff] %v600_v34  ;;  %v621_v36 = vadd.f32 %v836_v35, %v689_v18 }
 0x290   :  { %v612_v37 = vpop.f32.mrf.mxu1 }
 0x291   :  { %653 = vst [vmem:[%s1096_s7 + $0x50] sm:$0xff] %v621_v36  ;;  %v613_v38 = vadd.f32 %v689_v18, %v612_v37 }
 0x292   :  { %v837_v39 = vpop.f32.mrf.mxu1 }
 0x293   :  { %651 = vst [vmem:[%s1096_s7 + $0x40] sm:$0xff] %v613_v38  ;;  %v624_v40 = vadd.f32 %v837_v39, %v689_v18 }
 0x294   :  { %v615_v41 = vpop.f32.mrf.mxu1 }
 0x295   :  { %654 = vst [vmem:[%s1096_s7 + $0x58] sm:$0xff] %v624_v40  ;;  %v616_v42 = vadd.f32 %v689_v18, %v615_v41 }
 0x296   :  { %v840_v43 = vpop.f32.mrf.mxu1 }
 0x297   :  { %652 = vst [vmem:[%s1096_s7 + $0x48] sm:$0xff] %v616_v42  ;;  %v637_v44 = vadd.f32 %v840_v43, %v689_v18 }
 0x298   :  { %v628_v45 = vpop.f32.mrf.mxu1 }
 0x299   :  { %657 = vst [vmem:[%s1096_s7 + $0x70] sm:$0xff] %v637_v44  ;;  %v629_v46 = vadd.f32 %v689_v18, %v628_v45 }
 0x29a   :  { %v841_v47 = vpop.f32.mrf.mxu1 }
 0x29b   :  { %655 = vst [vmem:[%s1096_s7 + $0x60] sm:$0xff] %v629_v46  ;;  %v640_v48 = vadd.f32 %v841_v47, %v689_v18 }
 0x29c   :  { %v631_v49 = vpop.f32.mrf.mxu1 }
 0x29d   :  { %658 = vst [vmem:[%s1096_s7 + $0x78] sm:$0xff] %v640_v48  ;;  %v632_v50 = vadd.f32 %v689_v18, %v631_v49 }
 0x29f   :  { %656 = vst [vmem:[%s1096_s7 + $0x68] sm:$0xff] %v632_v50 }

</bundles_post_ra>
